<compile_context>
chip_gen: v7x
topology: tpu7x:2x2x1
jax: 0.10.0
libtpu: 0.0.40
codegen_flags: <defaults>
</compile_context>

<pallas_src>
import math

import jax
import jax.numpy as jnp
from jax.experimental import pallas as pl
from jax.experimental.pallas import tpu as pltpu


NUM_ROOMS = 30        # len(ROOM2IND)
_LANE = 128
_SUBLANE = 8
_MAX_TILE_T = 8192    # grid-step overhead already fully amortized well before this


def _round_up(x, m):
    return (x + m - 1) // m * m


def _vmem_capacity_bytes():
    try:
        info = pltpu.get_tpu_info()
        return int(getattr(info, "vmem_capacity_bytes", 64 * 1024 * 1024))
    except Exception:
        return 64 * 1024 * 1024   # conservative (v7x-sized) default


def _is_small_vmem_part():
    # v7x: 64 MiB VMEM per TensorCore (and 2 TCs/chip); v5e/v6e: 128 MiB, 1 TC.
    return _vmem_capacity_bytes() <= 96 * 1024 * 1024


def _vmem_limit_bytes():
    # ~96 MiB on 128 MiB parts (v5e/v6e); 48 MiB of headroom inside v7x's 64 MiB.
    return (48 if _is_small_vmem_part() else 96) * 1024 * 1024


def _pick_tile_t(t_rows, i_dim, r_pad, x_itemsize, out_itemsize, a_bytes, c_bytes):
    """Token-tile rows from an I-/dtype-aware VMEM budget.

    budget ~= 0.85 * vmem_limit - resident folded weight/bias
    per-row  = double-buffered x tile + double-buffered out tile
    """
    budget = int(_vmem_limit_bytes() * 0.85) - a_bytes - c_bytes
    per_row = 2 * i_dim * x_itemsize + 2 * r_pad * out_itemsize
    tile = max(budget, 0) // max(per_row, 1)
    tile = (tile // _SUBLANE) * _SUBLANE
    tile = max(_SUBLANE, min(tile, _MAX_TILE_T))
    # Never allocate a bigger tile than the (sublane-rounded) token count.
    tile = min(tile, _round_up(max(t_rows, 1), _SUBLANE))
    # v7x (2 TensorCores): ensure the "parallel" token axis has >= 2 grid steps.
    if _is_small_vmem_part() and t_rows > 2 * _SUBLANE and pl.cdiv(t_rows, tile) == 1:
        tile = max(_SUBLANE, _round_up(pl.cdiv(t_rows, 2), _SUBLANE))
    return tile


def prepare_room_params(weights, biases, *, lane_pad=_LANE, dtype=None):
    """One-time parameter fold (hoisted out of the per-call path).

    weights: iterable of per-room nn.Linear weights, each [O, I] (PyTorch layout).
    biases:  iterable of per-room biases, each [O].
    Returns (A [I, R_pad], c [1, R_pad] float32, num_rooms), R padded to `lane_pad`.
    `dtype=jnp.bfloat16` selects the bf16 fast path for A; the bias stays f32.
    """
    w = jnp.stack([jnp.asarray(wi) for wi in weights])      # [R, O, I]
    b = jnp.stack([jnp.asarray(bi) for bi in biases])       # [R, O]
    num_rooms = w.shape[0]

    a = jnp.sum(w.astype(jnp.float32), axis=1).T            # [I, R]  exact fold in f32
    c = jnp.sum(b.astype(jnp.float32), axis=1)              # [R]     kept f32 (tiny)

    r_pad = _round_up(num_rooms, lane_pad)                  # lane-dense output columns
    if r_pad != num_rooms:
        a = jnp.pad(a, ((0, 0), (0, r_pad - num_rooms)))
        c = jnp.pad(c, (0, r_pad - num_rooms))

    a = a.astype(dtype if dtype is not None else w.dtype)   # bf16 fast path if requested
    return a, c.reshape(1, r_pad), num_rooms


def _room_pred_kernel(x_ref, a_ref, c_ref, o_ref):
    # x: [TILE_T, I] (native dtype)   a: [I, R_pad]   c: [1, R_pad] f32   o: [TILE_T, R_pad]
    # Native-dtype tiles go straight to the MXU; f32 accumulation; f32 bias add.
    acc = jnp.dot(x_ref[...], a_ref[...], preferred_element_type=jnp.float32)
    o_ref[...] = (acc + c_ref[...]).astype(o_ref.dtype)


def room_prediction_img(view_feat, a_folded, c_folded, *, num_rooms=NUM_ROOMS,
                        trim_columns=True):
    """view_feat: [..., I] -> room logits [..., num_rooms] (padded cols if trim_columns=False)."""
    orig_shape = view_feat.shape
    i_dim = orig_shape[-1]
    x2d = view_feat.reshape(-1, i_dim)
    t = x2d.shape[0]
    r_pad = a_folded.shape[-1]

    if x2d.dtype != a_folded.dtype:
        raise ValueError(
            f"view_feat dtype {x2d.dtype} != folded weight dtype {a_folded.dtype}; keep the "
            "producer and prepare_room_params consistent (no wrapper-side cast is inserted: "
            "that would be an extra un-fused HBM pass over x and lose the bf16 traffic win).")

    out_dtype = view_feat.dtype
    x_isz = x2d.dtype.itemsize
    o_isz = jnp.dtype(out_dtype).itemsize
    a_bytes = i_dim * r_pad * a_folded.dtype.itemsize
    c_bytes = r_pad * c_folded.dtype.itemsize

    tile_t = _pick_tile_t(t, i_dim, r_pad, x_isz, o_isz, a_bytes, c_bytes)
    grid = (pl.cdiv(t, tile_t),)   # ragged last block: output writes past t are masked

    cost = pl.CostEstimate(
        flops=2 * t * i_dim * r_pad,
        transcendentals=0,
        bytes_accessed=(t * i_dim * x_isz + a_bytes + c_bytes + t * r_pad * o_isz),
    )

    def build(single_buffer_consts):
        if single_buffer_consts:
            # Constant index_map -> fetched once; single-buffer to save VMEM (matters on v7x).
            a_spec = pl.BlockSpec((i_dim, r_pad), lambda i: (0, 0),
                                  pipeline_mode=pl.Buffered(1))
            c_spec = pl.BlockSpec((1, r_pad), lambda i: (0, 0),
                                  pipeline_mode=pl.Buffered(1))
        else:
            a_spec = pl.BlockSpec((i_dim, r_pad), lambda i: (0, 0))
            c_spec = pl.BlockSpec((1, r_pad), lambda i: (0, 0))
        return pl.pallas_call(
            _room_pred_kernel,
            out_shape=jax.ShapeDtypeStruct((t, r_pad), out_dtype),
            grid=grid,
            in_specs=[
                # Token tile: double-buffered HBM<->VMEM DMA overlapped with the MXU.
                pl.BlockSpec((tile_t, i_dim), lambda i: (i, 0)),
                a_spec,
                c_spec,
            ],
            out_specs=pl.BlockSpec((tile_t, r_pad), lambda i: (i, 0)),
            compiler_params=pltpu.CompilerParams(
                dimension_semantics=("parallel",),       # shard token tiles across v7x's 2 TCs
                vmem_limit_bytes=_vmem_limit_bytes(),    # per-generation limit
            ),
            cost_estimate=cost,
        )

    try:
        out = build(True)(x2d, a_folded, c_folded)
    except Exception:
        # Older/stricter Pallas may reject pl.Buffered(1); default buffering is still correct.
        out = build(False)(x2d, a_folded, c_folded)

    if trim_columns:
        out = out[:, :num_rooms]
        return out.reshape(orig_shape[:-1] + (num_rooms,))
    # Consumers that mask the padded classes can skip the extra slice pass.
    return out.reshape(orig_shape[:-1] + (r_pad,))


def _reference(view_feat, weights, biases):
    # Literal per-room PyTorch semantics: Linear -> sum over output dim -> concat.
    outs = []
    for w, b in zip(weights, biases):
        h = jnp.einsum("...i,oi->...o", view_feat, w) + b
        outs.append(jnp.sum(h, axis=-1, keepdims=True))
    return jnp.concatenate(outs, axis=-1)


if __name__ == "__main__":
    # Small shapes consistent with the module: batch=2, views=8,
    # input_size (image_feat_size)=32, per-room output_size=16, 30 room types.
    B, V, I, O = 2, 8, 32, 16
    R = NUM_ROOMS

    key = jax.random.PRNGKey(0)
    kx, kw, kb = jax.random.split(key, 3)

    view_feat = jax.random.normal(kx, (B, V, I), dtype=jnp.float32)
    # Deterministic stand-in for the h5py rp_embed-initialized Linear weights
    # (no file I/O / checkpoint loading in-script).
    weights = jax.random.normal(kw, (R, O, I), dtype=jnp.float32) * (1.0 / math.sqrt(I))
    biases = jax.random.normal(kb, (R, O), dtype=jnp.float32) * 0.02

    ref = _reference(view_feat, list(weights), list(biases))

    # f32 path — exact vs. the per-room reference.
    a32, c32, num_rooms = prepare_room_params(list(weights), list(biases))
    out32 = jax.block_until_ready(
        room_prediction_img(view_feat, a32, c32, num_rooms=num_rooms))
    assert out32.shape == (B, V, R), out32.shape
    assert jnp.allclose(out32, ref, atol=1e-4, rtol=1e-4), "f32 mismatch vs per-room reference"

    # bf16 fast path — x and folded A live in bf16 in HBM (producer-side cast, not in the
    # wrapper); f32 accumulation + f32 bias, bf16 logits out.
    a16, c16, _ = prepare_room_params(list(weights), list(biases), dtype=jnp.bfloat16)
    view_feat_bf16 = view_feat.astype(jnp.bfloat16)
    out16 = jax.block_until_ready(
        room_prediction_img(view_feat_bf16, a16, c16, num_rooms=num_rooms))
    assert out16.shape == (B, V, R), out16.shape
    assert out16.dtype == jnp.bfloat16, out16.dtype
    assert jnp.allclose(out16.astype(jnp.float32), ref, atol=0.25, rtol=0.05), \
        "bf16 mismatch vs per-room reference"

    print("KERNEL_OK")
</pallas_src>

<mosaic_0001>
module attributes {stable_mosaic.version = 11 : i64} {
  func.func @_room_pred_kernel(%arg0: i32, %arg1: memref<16x32xf32, #tpu.memory_space<vmem>>, %arg2: memref<32x128xf32, #tpu.memory_space<vmem>>, %arg3: memref<1x128xf32, #tpu.memory_space<vmem>>, %arg4: memref<16x128xf32, #tpu.memory_space<vmem>>) attributes {dimension_semantics = [#tpu.dimension_semantics<parallel>], iteration_bounds = array<i64: 1>, scalar_prefetch = 0 : i64, scratch_operands = 0 : i64, tpu.core_type = #tpu.core_type<tc>, window_params = [{transform_indices = @transform_0, window_bounds = array<i64: 16, 32>}, {pipeline_mode = #tpu.pipeline_mode<synchronous>, transform_indices = @transform_1, window_bounds = array<i64: 32, 128>}, {pipeline_mode = #tpu.pipeline_mode<synchronous>, transform_indices = @transform_2, window_bounds = array<i64: 1, 128>}, {transform_indices = @transform_3, window_bounds = array<i64: 16, 128>}]} {
    %c0 = arith.constant 0 : index
    %c0_0 = arith.constant 0 : index
    %0 = vector.load %arg1[%c0, %c0_0] : memref<16x32xf32, #tpu.memory_space<vmem>>, vector<16x32xf32>
    %c0_1 = arith.constant 0 : index
    %c0_2 = arith.constant 0 : index
    %1 = vector.load %arg2[%c0_1, %c0_2] : memref<32x128xf32, #tpu.memory_space<vmem>>, vector<32x128xf32>
    %cst = arith.constant dense<0.000000e+00> : vector<16x128xf32>
    %2 = tpu.matmul %0, %1, %cst {dimension_numbers = #tpu.dot_dimension_numbers<[1], [0], [0], [1], [0, 0, 1, 1], [], []>} : vector<16x32xf32>, vector<32x128xf32>, vector<16x128xf32> -> vector<16x128xf32>
    %c0_3 = arith.constant 0 : index
    %c0_4 = arith.constant 0 : index
    %3 = vector.load %arg3[%c0_3, %c0_4] : memref<1x128xf32, #tpu.memory_space<vmem>>, vector<1x128xf32>
    %4 = vector.broadcast %3 : vector<1x128xf32> to vector<16x128xf32>
    %5 = arith.addf %2, %4 : vector<16x128xf32>
    %c0_5 = arith.constant 0 : index
    %c0_6 = arith.constant 0 : index
    %6 = vector.load %arg4[%c0_5, %c0_6] : memref<16x128xf32, #tpu.memory_space<vmem>>, vector<16x128xf32>
    tpu.vector_store %arg4[%c0_5, %c0_6], %5 {strides = array<i32>} : memref<16x128xf32, #tpu.memory_space<vmem>>, vector<16x128xf32>,
    return
  }
  func.func @transform_0(%arg0: i32) -> (i32, i32) {
    %c0_i32 = arith.constant 0 : i32
    %c0_i32_0 = arith.constant 0 : i32
    return %arg0, %c0_i32 : i32, i32
  }
  func.func @transform_1(%arg0: i32) -> (i32, i32) {
    %c0_i32 = arith.constant 0 : i32
    %c0_i32_0 = arith.constant 0 : i32
    %c0_i32_1 = arith.constant 0 : i32
    return %c0_i32, %c0_i32_0 : i32, i32
  }
  func.func @transform_2(%arg0: i32) -> (i32, i32) {
    %c0_i32 = arith.constant 0 : i32
    %c0_i32_0 = arith.constant 0 : i32
    %c0_i32_1 = arith.constant 0 : i32
    return %c0_i32, %c0_i32_0 : i32, i32
  }
  func.func @transform_3(%arg0: i32) -> (i32, i32) {
    %c0_i32 = arith.constant 0 : i32
    %c0_i32_0 = arith.constant 0 : i32
    return %arg0, %c0_i32 : i32, i32
  }
}

module attributes {stable_mosaic.version = 11 : i64} {
  func.func @_room_pred_kernel(%arg0: i32, %arg1: memref<16x32xf32, #tpu.memory_space<vmem>>, %arg2: memref<32x128xf32, #tpu.memory_space<vmem>>, %arg3: memref<1x128xf32, #tpu.memory_space<vmem>>, %arg4: memref<16x128xf32, #tpu.memory_space<vmem>>) attributes {dimension_semantics = [#tpu.dimension_semantics<parallel>], iteration_bounds = array<i64: 1>, scalar_prefetch = 0 : i64, scratch_operands = 0 : i64, tpu.core_type = #tpu.core_type<tc>, window_params = [{transform_indices = @transform_0, window_bounds = array<i64: 16, 32>}, {pipeline_mode = #tpu.pipeline_mode<synchronous>, transform_indices = @transform_1, window_bounds = array<i64: 32, 128>}, {pipeline_mode = #tpu.pipeline_mode<synchronous>, transform_indices = @transform_2, window_bounds = array<i64: 1, 128>}, {transform_indices = @transform_3, window_bounds = array<i64: 16, 128>}]} {
    %c0 = arith.constant 0 : index
    %c0_0 = arith.constant 0 : index
    %0 = vector.load %arg1[%c0, %c0_0] : memref<16x32xf32, #tpu.memory_space<vmem>>, vector<16x32xf32>
    %c0_1 = arith.constant 0 : index
    %c0_2 = arith.constant 0 : index
    %1 = vector.load %arg2[%c0_1, %c0_2] : memref<32x128xf32, #tpu.memory_space<vmem>>, vector<32x128xf32>
    %cst = arith.constant dense<0.000000e+00> : vector<16x128xf32>
    %2 = tpu.matmul %0, %1, %cst {dimension_numbers = #tpu.dot_dimension_numbers<[1], [0], [0], [1], [0, 0, 1, 1], [], []>} : vector<16x32xf32>, vector<32x128xf32>, vector<16x128xf32> -> vector<16x128xf32>
    %c0_3 = arith.constant 0 : index
    %c0_4 = arith.constant 0 : index
    %3 = vector.load %arg3[%c0_3, %c0_4] : memref<1x128xf32, #tpu.memory_space<vmem>>, vector<1x128xf32>
    %4 = vector.broadcast %3 : vector<1x128xf32> to vector<16x128xf32>
    %5 = arith.addf %2, %4 : vector<16x128xf32>
    %c0_5 = arith.constant 0 : index
    %c0_6 = arith.constant 0 : index
    %6 = vector.load %arg4[%c0_5, %c0_6] : memref<16x128xf32, #tpu.memory_space<vmem>>, vector<16x128xf32>
    tpu.vector_store %arg4[%c0_5, %c0_6], %5 {strides = array<i32>} : memref<16x128xf32, #tpu.memory_space<vmem>>, vector<16x128xf32>,
    return
  }
  func.func @transform_0(%arg0: i32) -> (i32, i32) {
    %c0_i32 = arith.constant 0 : i32
    %c0_i32_0 = arith.constant 0 : i32
    return %arg0, %c0_i32 : i32, i32
  }
  func.func @transform_1(%arg0: i32) -> (i32, i32) {
    %c0_i32 = arith.constant 0 : i32
    %c0_i32_0 = arith.constant 0 : i32
    %c0_i32_1 = arith.constant 0 : i32
    return %c0_i32, %c0_i32_0 : i32, i32
  }
  func.func @transform_2(%arg0: i32) -> (i32, i32) {
    %c0_i32 = arith.constant 0 : i32
    %c0_i32_0 = arith.constant 0 : i32
    %c0_i32_1 = arith.constant 0 : i32
    return %c0_i32, %c0_i32_0 : i32, i32
  }
  func.func @transform_3(%arg0: i32) -> (i32, i32) {
    %c0_i32 = arith.constant 0 : i32
    %c0_i32_0 = arith.constant 0 : i32
    return %arg0, %c0_i32 : i32, i32
  }
}

</mosaic_0001>

<bundles_post_ra>
// kernel: tpu_custom_call.1
= control target key start
LH: loop header
LB: loop body
LE: loop exit
PB: predicated region body
PF: predicated region fallthrough
CT: control target
= control target key end

     0   :  { %8 = vsyncpa [#allocation3], 0  ;;  %s336_s0 = inlined_call_operand.hbm [shape: f32[16,32], index: 0, kind: input, shape index: {}]   ;;  %s337_s1 = inlined_call_operand.hbm [shape: f32[32,128], index: 1, kind: input, shape index: {}]   ;;  %s338_s2 = inlined_call_operand.vmem [shape: f32[1,128], index: 2, kind: input, shape index: {}]   ;;  %s339_s3 = inlined_call_operand.hbm [shape: f32[16,128], index: 3, kind: output, shape index: {}]  }
   0x1   :  { %9 = vsyncpa [#allocation6], 0 }
   0x2   :  { %10 = vsyncpa [#allocation4], 0  ;;  %s263_s12 = smov [#allocation2]   ;;  %s191_s16 = scalar_lea.hbm %s336_s0, 256 }
   0x3   :  { %s16_s13 = sshll.u32 %s263_s12, 4  ;;  %p192_p0 = scmp.ne.s32.totalorder %s336_s0, %s191_s16  ;;  %s17_s13 = int_to_ptr.vmem [resolvable:$true] %s16_s13 }
   0x4   :  { %p195_p1 = scmp.lt.u32.totalorder %s191_s16, %s336_s0 }
   0x6   :  { %p197_p2 = pnand %p195_p1, %p192_p0 }
   0x8   :  { %200 = shalt.err (!%p197_p2)
}
   0x9   :  { %s201_s21 = scalar_lea.vmem %s17_s13, 256  ;;  %p206_p4 = scmp.lt.s32.totalorder %s17_s13, %s17_s13 }
   0xa   :  { %p202_p3 = scmp.ne.s32.totalorder %s17_s13, %s201_s21  ;;  %p207_p5 = scmp.lt.s32.totalorder %s201_s21, %s201_s21 }
   0xc   :  { %p208_p6 = por %p207_p5, %p206_p4 }
   0xe   :  { %p209_p7 = pnand %p208_p6, %p202_p3 }
  0x10   :  { %212 = shalt.err (!%p209_p7)
}
  0x11   :  { %s264_s22 = smov 128   ;;  %s265_s23 = smov 8  }
  0x12   :  { %22 = dma.hbm_to_vmem [thread:$0]  %s336_s0, 256, %s17_s13, [#allocation3], %s264_s22, %s264_s22, %s265_s23  }
  0x13   :  { %s266_s26 = smov [#allocation5]   ;;  %s213_s30 = scalar_lea.hbm %s337_s1, 512 }
  0x14   :  { %s28_s27 = sshll.u32 %s266_s26, 4  ;;  %p214_p8 = scmp.ne.s32.totalorder %s337_s1, %s213_s30  ;;  %s29_s27 = int_to_ptr.vmem [resolvable:$true] %s28_s27 }
  0x15   :  { %p217_p9 = scmp.lt.u32.totalorder %s213_s30, %s337_s1 }
  0x17   :  { %p219_p10 = pnand %p217_p9, %p214_p8 }
  0x19   :  { %222 = shalt.err (!%p219_p10)
}
  0x1a   :  { %s223_s8 = scalar_lea.vmem %s29_s27, 512  ;;  %p228_p12 = scmp.lt.s32.totalorder %s29_s27, %s29_s27 }
  0x1b   :  { %p224_p11 = scmp.ne.s32.totalorder %s29_s27, %s223_s8  ;;  %p229_p13 = scmp.lt.s32.totalorder %s223_s8, %s223_s8 }
  0x1d   :  { %p230_p0 = por %p229_p13, %p228_p12 }
  0x1f   :  { %p231_p1 = pnand %p230_p0, %p224_p11 }
  0x21   :  { %234 = shalt.err (!%p231_p1)
}
  0x22   :  { %34 = dma.hbm_to_vmem [thread:$0]  %s337_s1, 512, %s29_s27, [#allocation6], %s264_s22, %s264_s22, %s265_s23  }
  0x23   :  { %257 = dma.done.wait [#allocation3], 256  }
  0x24   :  { %258 = vsyncadd [#allocation3], 4294967040 }
  0x25   :  { %259 = dma.done.wait [#allocation6], 512  }
  0x26   :  { %260 = vsyncadd [#allocation6], 4294966784  ;;  %vm56_vm0 = vcmask 261120   ;;  %v45_v0 = vld [vmem:[#allocation5] sm:$0xff]  ;;  %v46_v1 = vld [vmem:[#allocation5 + $0x8] sm:$0xff]  ;;  %s267_s11 = smov [#allocation7]  }
  0x27   :  { %v47_v2 = vld [vmem:[#allocation5 + $0x10] sm:$0xff]  ;;  %v178_v3 = vpack.c.bf16 %v46_v1, %v45_v0  ;;  %v48_v4 = vld [vmem:[#allocation5 + $0x18] sm:$0xff]  ;;  %s145_s12 = sshll.u32 %s267_s11, 4  ;;  %s146_s12 = int_to_ptr.vmem [resolvable:$true] %s145_s12 }
  0x28   :  { %v43_v5 = vld [vmem:[#allocation2] sm:$0xff]  ;;  %v182_v6 = vpack.c.bf16 %v48_v4, %v47_v2  ;;  %v44_v7 = vld [vmem:[#allocation2 + $0x8] sm:$0xff]  ;;  %s235_s13 = scalar_lea.vmem %s146_s12, 256  ;;  %p240_p3 = scmp.lt.s32.totalorder %s146_s12, %s146_s12 }
  0x29   :  { %175 = vmatprep.mubr.msk.f32.mxu0 %vm56_vm0, %v43_v5  ;;  %179 = vmatprep.subr.bf16.mxu0 %v178_v3  ;;  %v158_v8 = vld [vmem:[%s338_s2] ss:$0 sm:$0xff]  ;;  %p236_p2 = scmp.ne.s32.totalorder %s146_s12, %s235_s13  ;;  %p241_p4 = scmp.lt.s32.totalorder %s235_s13, %s235_s13 }
  0x2a   :  { %181 = vmatpush3.bf16.msra.mxu0 %v178_v3 }
  0x2b   :  { %183 = vmatprep.subr.bf16.mxu0 %v182_v6  ;;  %p242_p5 = por %p241_p4, %p240_p3 }
  0x2d   :  { %p243_p6 = pnand %p242_p5, %p236_p2 }
  0x2e   :  { %185 = vmatpush3.bf16.msra.mxu0 %v182_v6 }
  0x31   :  { %176 = vmatmul.mubr.msk.f32.vlgmr.msra.gmra.mrb[0].mxu0 %vm56_vm0, %v44_v7 }
 0x104   :  { %v177_v9 = vpop.f32.mrb[0].mxu0 }
 0x105   :  { %v135_v10 = vadd.f32 %v177_v9, %v158_v8  ;;  %v129_v11 = vpop.f32.mrb[1].mxu0 }
 0x106   :  { %v130_v12 = vadd.f32 %v158_v8, %v129_v11 }
 0x107   :  { %139 = vst [vmem:[#allocation7 + $0x8] sm:$0xff] %v135_v10 }
 0x108   :  { %138 = vst [vmem:[#allocation7] sm:$0xff] %v130_v12 }
 0x109   :  { %246 = shalt.err (!%p243_p6)
}
 0x10a   :  { %s247_s2 = scalar_lea.hbm %s339_s3, 256 }
 0x10b   :  { %p248_p7 = scmp.ne.s32.totalorder %s339_s3, %s247_s2  ;;  %p251_p8 = scmp.lt.u32.totalorder %s247_s2, %s339_s3 }
 0x10d   :  { %p253_p9 = pnand %p251_p8, %p248_p7 }
 0x10f   :  { %256 = shalt.err (!%p253_p9)
}
 0x110   :  { %151 = dma.vmem_to_hbm [thread:$0]  %s146_s12, 256, %s339_s3, [#allocation4], %s264_s22, %s264_s22, %s265_s23  }
 0x111   :  { %261 = dma.done.wait [#allocation4], 256  }
 0x112   :  { %262 = vsyncadd [#allocation4], 4294967040 }
 0x113   :  { %155 = vsyncpa [#allocation3], 1 }
 0x114   :  { %156 = vsyncpa [#allocation6], 1 }
 0x115   :  { %157 = vsyncpa [#allocation4], 1 }

// kernel: tpu_custom_call.1
= control target key start
LH: loop header
LB: loop body
LE: loop exit
PB: predicated region body
PF: predicated region fallthrough
CT: control target
= control target key end

     0   :  { %8 = vsyncpa [#allocation3], 0  ;;  %s336_s0 = inlined_call_operand.hbm [shape: f32[16,32], index: 0, kind: input, shape index: {}]   ;;  %s337_s1 = inlined_call_operand.hbm [shape: f32[32,128], index: 1, kind: input, shape index: {}]   ;;  %s338_s2 = inlined_call_operand.vmem [shape: f32[1,128], index: 2, kind: input, shape index: {}]   ;;  %s339_s3 = inlined_call_operand.hbm [shape: f32[16,128], index: 3, kind: output, shape index: {}]  }
   0x1   :  { %9 = vsyncpa [#allocation6], 0 }
   0x2   :  { %10 = vsyncpa [#allocation4], 0  ;;  %s263_s12 = smov [#allocation2]   ;;  %s191_s16 = scalar_lea.hbm %s336_s0, 256 }
   0x3   :  { %s16_s13 = sshll.u32 %s263_s12, 4  ;;  %p192_p0 = scmp.ne.s32.totalorder %s336_s0, %s191_s16  ;;  %s17_s13 = int_to_ptr.vmem [resolvable:$true] %s16_s13 }
   0x4   :  { %p195_p1 = scmp.lt.u32.totalorder %s191_s16, %s336_s0 }
   0x6   :  { %p197_p2 = pnand %p195_p1, %p192_p0 }
   0x8   :  { %200 = shalt.err (!%p197_p2)
}
   0x9   :  { %s201_s21 = scalar_lea.vmem %s17_s13, 256  ;;  %p206_p4 = scmp.lt.s32.totalorder %s17_s13, %s17_s13 }
   0xa   :  { %p202_p3 = scmp.ne.s32.totalorder %s17_s13, %s201_s21  ;;  %p207_p5 = scmp.lt.s32.totalorder %s201_s21, %s201_s21 }
   0xc   :  { %p208_p6 = por %p207_p5, %p206_p4 }
   0xe   :  { %p209_p7 = pnand %p208_p6, %p202_p3 }
  0x10   :  { %212 = shalt.err (!%p209_p7)
}
  0x11   :  { %s264_s22 = smov 128   ;;  %s265_s23 = smov 8  }
  0x12   :  { %22 = dma.hbm_to_vmem [thread:$0]  %s336_s0, 256, %s17_s13, [#allocation3], %s264_s22, %s264_s22, %s265_s23  }
  0x13   :  { %s266_s26 = smov [#allocation5]   ;;  %s213_s30 = scalar_lea.hbm %s337_s1, 512 }
  0x14   :  { %s28_s27 = sshll.u32 %s266_s26, 4  ;;  %p214_p8 = scmp.ne.s32.totalorder %s337_s1, %s213_s30  ;;  %s29_s27 = int_to_ptr.vmem [resolvable:$true] %s28_s27 }
  0x15   :  { %p217_p9 = scmp.lt.u32.totalorder %s213_s30, %s337_s1 }
  0x17   :  { %p219_p10 = pnand %p217_p9, %p214_p8 }
  0x19   :  { %222 = shalt.err (!%p219_p10)
}
  0x1a   :  { %s223_s8 = scalar_lea.vmem %s29_s27, 512  ;;  %p228_p12 = scmp.lt.s32.totalorder %s29_s27, %s29_s27 }
  0x1b   :  { %p224_p11 = scmp.ne.s32.totalorder %s29_s27, %s223_s8  ;;  %p229_p13 = scmp.lt.s32.totalorder %s223_s8, %s223_s8 }
  0x1d   :  { %p230_p0 = por %p229_p13, %p228_p12 }
  0x1f   :  { %p231_p1 = pnand %p230_p0, %p224_p11 }
  0x21   :  { %234 = shalt.err (!%p231_p1)
}
  0x22   :  { %34 = dma.hbm_to_vmem [thread:$0]  %s337_s1, 512, %s29_s27, [#allocation6], %s264_s22, %s264_s22, %s265_s23  }
  0x23   :  { %257 = dma.done.wait [#allocation3], 256  }
  0x24   :  { %258 = vsyncadd [#allocation3], 4294967040 }
  0x25   :  { %259 = dma.done.wait [#allocation6], 512  }
  0x26   :  { %260 = vsyncadd [#allocation6], 4294966784  ;;  %vm56_vm0 = vcmask 261120   ;;  %v45_v0 = vld [vmem:[#allocation5] sm:$0xff]  ;;  %v46_v1 = vld [vmem:[#allocation5 + $0x8] sm:$0xff]  ;;  %s267_s11 = smov [#allocation7]  }
  0x27   :  { %v47_v2 = vld [vmem:[#allocation5 + $0x10] sm:$0xff]  ;;  %v178_v3 = vpack.c.bf16 %v46_v1, %v45_v0  ;;  %v48_v4 = vld [vmem:[#allocation5 + $0x18] sm:$0xff]  ;;  %s145_s12 = sshll.u32 %s267_s11, 4  ;;  %s146_s12 = int_to_ptr.vmem [resolvable:$true] %s145_s12 }
  0x28   :  { %v43_v5 = vld [vmem:[#allocation2] sm:$0xff]  ;;  %v182_v6 = vpack.c.bf16 %v48_v4, %v47_v2  ;;  %v44_v7 = vld [vmem:[#allocation2 + $0x8] sm:$0xff]  ;;  %s235_s13 = scalar_lea.vmem %s146_s12, 256  ;;  %p240_p3 = scmp.lt.s32.totalorder %s146_s12, %s146_s12 }
  0x29   :  { %175 = vmatprep.mubr.msk.f32.mxu0 %vm56_vm0, %v43_v5  ;;  %179 = vmatprep.subr.bf16.mxu0 %v178_v3  ;;  %v158_v8 = vld [vmem:[%s338_s2] ss:$0 sm:$0xff]  ;;  %p236_p2 = scmp.ne.s32.totalorder %s146_s12, %s235_s13  ;;  %p241_p4 = scmp.lt.s32.totalorder %s235_s13, %s235_s13 }
  0x2a   :  { %181 = vmatpush3.bf16.msra.mxu0 %v178_v3 }
  0x2b   :  { %183 = vmatprep.subr.bf16.mxu0 %v182_v6  ;;  %p242_p5 = por %p241_p4, %p240_p3 }
  0x2d   :  { %p243_p6 = pnand %p242_p5, %p236_p2 }
  0x2e   :  { %185 = vmatpush3.bf16.msra.mxu0 %v182_v6 }
  0x31   :  { %176 = vmatmul.mubr.msk.f32.vlgmr.msra.gmra.mrb[0].mxu0 %vm56_vm0, %v44_v7 }
 0x104   :  { %v177_v9 = vpop.f32.mrb[0].mxu0 }
 0x105   :  { %v135_v10 = vadd.f32 %v177_v9, %v158_v8  ;;  %v129_v11 = vpop.f32.mrb[1].mxu0 }
 0x106   :  { %v130_v12 = vadd.f32 %v158_v8, %v129_v11 }
 0x107   :  { %139 = vst [vmem:[#allocation7 + $0x8] sm:$0xff] %v135_v10 }
 0x108   :  { %138 = vst [vmem:[#allocation7] sm:$0xff] %v130_v12 }
 0x109   :  { %246 = shalt.err (!%p243_p6)
}
 0x10a   :  { %s247_s2 = scalar_lea.hbm %s339_s3, 256 }
 0x10b   :  { %p248_p7 = scmp.ne.s32.totalorder %s339_s3, %s247_s2  ;;  %p251_p8 = scmp.lt.u32.totalorder %s247_s2, %s339_s3 }
 0x10d   :  { %p253_p9 = pnand %p251_p8, %p248_p7 }
 0x10f   :  { %256 = shalt.err (!%p253_p9)
}
 0x110   :  { %151 = dma.vmem_to_hbm [thread:$0]  %s146_s12, 256, %s339_s3, [#allocation4], %s264_s22, %s264_s22, %s265_s23  }
 0x111   :  { %261 = dma.done.wait [#allocation4], 256  }
 0x112   :  { %262 = vsyncadd [#allocation4], 4294967040 }
 0x113   :  { %155 = vsyncpa [#allocation3], 1 }
 0x114   :  { %156 = vsyncpa [#allocation6], 1 }
 0x115   :  { %157 = vsyncpa [#allocation4], 1 }

</bundles_post_ra>
